<compile_context>
chip_gen: v7x
topology: tpu7x:2x2x1
jax: 0.10.0
libtpu: 0.0.40
codegen_flags: <defaults>
</compile_context>

<pallas_src>
import functools

import jax
import jax.numpy as jnp
from jax.experimental import pallas as pl
from jax.experimental.pallas import tpu as pltpu


def _out_transition_kernel(x_ref, w_ref, b_ref, o_ref):
    # x_ref: (C, THW)  activation tile, spatial on the lane axis
    # w_ref: (L, C)    1x1-conv weight (resident)
    # b_ref: (L, 1)    bias (resident)
    # o_ref: (L, THW)  output tile
    y = jnp.dot(w_ref[...], x_ref[...], preferred_element_type=jnp.float32)
    y = y + b_ref[...]                      # (L, 1) broadcast over lanes
    o_ref[...] = jax.nn.sigmoid(y).astype(o_ref.dtype)


def _pick_spatial_tile(hw, max_lanes):
    """Largest spatial tile that divides hw, is a multiple of 128 (or the full
    extent, which is always a legal block dim), and is <= max_lanes."""
    if hw <= max_lanes:
        return hw
    cap = max_lanes - (max_lanes % 128)
    for t in range(cap, 0, -128):
        if hw % t == 0:
            return t
    return hw  # no 128-multiple divisor: fall back to the full extent


@functools.partial(jax.jit, static_argnames=("max_tile_lanes",))
def output_transition_2d(x_nchw, weight, bias, *, max_tile_lanes=16384):
    """sigmoid(Conv2d(in_channel, n_labels, kernel_size=1)(x)).

    x_nchw: (N, C, H, W) float32
    weight: (L, C) float32   (PyTorch Conv2d weight squeezed from (L, C, 1, 1))
    bias:   (L,)   float32
    returns: (N, L, H, W) float32
    """
    N, C, H, W = x_nchw.shape
    L = weight.shape[0]
    HW = H * W

    thw = _pick_spatial_tile(HW, max_tile_lanes)
    grid = (N, HW // thw)

    # Pure reshape: NCHW -> (N, C, H*W).  No transpose, no extra HBM traffic.
    x3 = x_nchw.reshape(N, C, HW)
    w = weight.astype(jnp.float32)            # (L, C)
    b = bias.reshape(L, 1).astype(jnp.float32)  # (L, 1)

    cost = pl.CostEstimate(
        flops=2 * N * HW * C * L,
        transcendentals=N * HW * L,
        bytes_accessed=4 * (N * C * HW + N * L * HW + L * C + L),
    )

    out3 = pl.pallas_call(
        _out_transition_kernel,
        out_shape=jax.ShapeDtypeStruct((N, L, HW), x_nchw.dtype),
        grid=grid,
        in_specs=[
            # x tile: (C, THW), batch dim squeezed out of the kernel ref.
            pl.BlockSpec((None, C, thw), lambda n, s: (n, 0, s)),
            # weight / bias: whole arrays, resident across the grid.
            pl.BlockSpec((L, C), lambda n, s: (0, 0)),
            pl.BlockSpec((L, 1), lambda n, s: (0, 0)),
        ],
        out_specs=pl.BlockSpec((None, L, thw), lambda n, s: (n, 0, s)),
        compiler_params=pltpu.CompilerParams(
            dimension_semantics=("parallel", "parallel"),
        ),
        cost_estimate=cost,
    )(x3, w, b)

    # Pure reshape back: (N, L, H*W) -> (N, L, H, W).
    return out3.reshape(N, L, H, W)


def _reference(x_nchw, weight, bias):
    # Pure-JAX reference of sigmoid(1x1 conv) for verification.
    y = jnp.einsum("nchw,lc->nlhw", x_nchw, weight) + bias[None, :, None, None]
    return jax.nn.sigmoid(y)


if __name__ == "__main__":
    key = jax.random.PRNGKey(0)
    kx, kw, kb = jax.random.split(key, 3)

    N, C, H, W = 2, 4, 16, 16   # batch=2, in_channel=4, spatial=16
    L = 3                        # n_labels

    x = jax.random.normal(kx, (N, C, H, W), dtype=jnp.float32)
    weight = jax.random.normal(kw, (L, C), dtype=jnp.float32) * 0.1
    bias = jax.random.normal(kb, (L,), dtype=jnp.float32) * 0.1

    out = output_transition_2d(x, weight, bias)
    out = jax.block_until_ready(out)

    ref = _reference(x, weight, bias)
    assert out.shape == (N, L, H, W)
    assert jnp.allclose(out, ref, atol=1e-5, rtol=1e-5), "mismatch vs reference"

    print("KERNEL_OK")
</pallas_src>

<mosaic_0001>
module attributes {stable_mosaic.version = 11 : i64} {
  func.func @_out_transition_kernel(%arg0: i32, %arg1: i32, %arg2: memref<1x4x256xf32, #tpu.memory_space<vmem>>, %arg3: memref<3x4xf32, #tpu.memory_space<vmem>>, %arg4: memref<3x1xf32, #tpu.memory_space<vmem>>, %arg5: memref<1x3x256xf32, #tpu.memory_space<vmem>>) attributes {dimension_semantics = [#tpu.dimension_semantics<parallel>, #tpu.dimension_semantics<parallel>], iteration_bounds = array<i64: 2, 1>, scalar_prefetch = 0 : i64, scratch_operands = 0 : i64, tpu.core_type = #tpu.core_type<tc>, window_params = [{transform_indices = @transform_0, window_bounds = array<i64: 1, 4, 256>}, {pipeline_mode = #tpu.pipeline_mode<synchronous>, transform_indices = @transform_1, window_bounds = array<i64: 3, 4>}, {pipeline_mode = #tpu.pipeline_mode<synchronous>, transform_indices = @transform_2, window_bounds = array<i64: 3, 1>}, {transform_indices = @transform_3, window_bounds = array<i64: 1, 3, 256>}]} {
    %c0 = arith.constant 0 : index
    %c0_0 = arith.constant 0 : index
    %0 = vector.load %arg3[%c0, %c0_0] : memref<3x4xf32, #tpu.memory_space<vmem>>, vector<3x4xf32>
    %c0_1 = arith.constant 0 : index
    %c0_2 = arith.constant 0 : index
    %c0_3 = arith.constant 0 : index
    %1 = vector.load %arg2[%c0_1, %c0_2, %c0_3] : memref<1x4x256xf32, #tpu.memory_space<vmem>>, vector<1x4x256xf32>
    %2 = vector.shape_cast %1 : vector<1x4x256xf32> to vector<4x256xf32>
    %cst = arith.constant dense<0.000000e+00> : vector<3x256xf32>
    %3 = tpu.matmul %0, %2, %cst {dimension_numbers = #tpu.dot_dimension_numbers<[1], [0], [0], [1], [0, 0, 1, 1], [], []>} : vector<3x4xf32>, vector<4x256xf32>, vector<3x256xf32> -> vector<3x256xf32>
    %c0_4 = arith.constant 0 : index
    %c0_5 = arith.constant 0 : index
    %4 = vector.load %arg4[%c0_4, %c0_5] : memref<3x1xf32, #tpu.memory_space<vmem>>, vector<3x1xf32>
    %5 = vector.broadcast %4 : vector<3x1xf32> to vector<3x256xf32>
    %6 = arith.addf %3, %5 : vector<3x256xf32>
    %7 = arith.negf %6 : vector<3x256xf32>
    %8 = math.exp %7 : vector<3x256xf32>
    %cst_6 = arith.constant 1.000000e+00 : f32
    %9 = vector.broadcast %cst_6 : f32 to vector<3x256xf32>
    %10 = arith.addf %9, %8 : vector<3x256xf32>
    %11 = arith.divf %9, %10 : vector<3x256xf32>
    %c0_7 = arith.constant 0 : index
    %c0_8 = arith.constant 0 : index
    %c0_9 = arith.constant 0 : index
    %12 = vector.load %arg5[%c0_7, %c0_8, %c0_9] : memref<1x3x256xf32, #tpu.memory_space<vmem>>, vector<1x3x256xf32>
    %13 = vector.shape_cast %12 : vector<1x3x256xf32> to vector<3x256xf32>
    %14 = vector.shape_cast %11 : vector<3x256xf32> to vector<1x3x256xf32>
    tpu.vector_store %arg5[%c0_7, %c0_8, %c0_9], %14 {strides = array<i32>} : memref<1x3x256xf32, #tpu.memory_space<vmem>>, vector<1x3x256xf32>,
    return
  }
  func.func @transform_0(%arg0: i32, %arg1: i32) -> (i32, i32, i32) {
    %c0_i32 = arith.constant 0 : i32
    %c0_i32_0 = arith.constant 0 : i32
    return %arg0, %c0_i32, %arg1 : i32, i32, i32
  }
  func.func @transform_1(%arg0: i32, %arg1: i32) -> (i32, i32) {
    %c0_i32 = arith.constant 0 : i32
    %c0_i32_0 = arith.constant 0 : i32
    %c0_i32_1 = arith.constant 0 : i32
    return %c0_i32, %c0_i32_0 : i32, i32
  }
  func.func @transform_2(%arg0: i32, %arg1: i32) -> (i32, i32) {
    %c0_i32 = arith.constant 0 : i32
    %c0_i32_0 = arith.constant 0 : i32
    %c0_i32_1 = arith.constant 0 : i32
    return %c0_i32, %c0_i32_0 : i32, i32
  }
  func.func @transform_3(%arg0: i32, %arg1: i32) -> (i32, i32, i32) {
    %c0_i32 = arith.constant 0 : i32
    %c0_i32_0 = arith.constant 0 : i32
    return %arg0, %c0_i32, %arg1 : i32, i32, i32
  }
}

</mosaic_0001>

<bundles_post_ra>
// kernel: output_transition_2d.1
= control target key start
LH: loop header
LB: loop body
LE: loop exit
PB: predicated region body
PF: predicated region fallthrough
CT: control target
= control target key end

     0   :  { %s504_s12 = smov 0   ;;  %s506_s13 = smov 0   ;;  %s546_s0 = inlined_call_operand.vmem [shape: f32[2,4,256], index: 0, kind: input, shape index: {}]   ;;  %s547_s1 = inlined_call_operand.vmem [shape: f32[3,4], index: 1, kind: input, shape index: {}]   ;;  %s548_s2 = inlined_call_operand.vmem [shape: f32[3,1], index: 2, kind: input, shape index: {}]   ;;  %s549_s3 = inlined_call_operand.vmem [shape: f32[2,3,256], index: 3, kind: output, shape index: {}]  }
   0x1   :  { %s508_s14 = smov 0  }
   0x2 LB: > { %s25_s15 = sadd.s32 1, %s476_s13  ;;  %p408_p0 = scmp.ge.s32.totalorder %s480_s14, 1  ;;  %s480_s14 = sphi %s508_s14, %s13_s14   ;;  %s476_s13 = sphi %s506_s13, %s551_s13   ;;  %s472_s12 = sphi %s504_s12, %s550_s12  }
   0x3   : > { %p27_p1 = scmp.ge.s32.totalorder %s25_s15, 2  ;;  %p158_p2 = scmp.lt.s32.totalorder %s480_s14, 3 }
   0x5   : > { %s553_s15 = smov (%p27_p1, %s25_s15), 0  ;;  %p159_p3 = pnand %p408_p0, %p158_p2 }
   0x6   : > { %p191_p4 = scmp.lt.s32.totalorder (!%p159_p3), %s472_s12, 1  ;;  %v482_v0 = vmov (!%p159_p3), 0.0   ;;  %v212_v1 = vld [vmem:[%s548_s2] sm:$0x7] (!%p159_p3)  ;;  %v483_v2 = vmov (!%p159_p3), 0   ;;  %vm224_vm0 = vcmask (!%p159_p3), 1043456  }
   0x7   : > { %162 = sbr.rel (%p159_p3) target bundleno = 266 (0x10a), region = 32  ;;  %293 = vmatprep.mubr.f32.mxu0 (!%p159_p3), %v482_v0  ;;  %448 = vset.pattern.permute.xlu0 (!%p159_p3), %v483_v2  ;;  %v210_v5 = vld [vmem:[%s547_s1] sm:$0x7] (!%p159_p3)  ;;  %vm220_vm1 = vcmask (!%p159_p3), 31744  }
   0x8   : > { %215 = vperm.xlu0 (!%p159_p3), %448, %v212_v1  }
   0xe   : > { %s555_s12 = smov (!%p191_p4, %s472_s12), 1 }
   0xf   : > { %s420_s18 = sshll.u32 %s555_s12, 3 }
  0x10   : > { %s198_s21 = scalar_lea.vmem %s546_s0, %s420_s18  ;;  %s208_s26 = scalar_lea.vmem %s549_s3, %s420_s18 }
  0x11   : > { %v211_v3 = vld [vmem:[%s198_s21] sm:$0xff] }
  0x12   : > { %v219_v4 = vcombine.high %v211_v3, %v211_v3 }
  0x14   : > { %413 = vmatprep.subr.msk.mxu0 %vm224_vm0, %v219_v4 }
  0x15   : > { %414 = vmatpush1.msk.msra.mxu0 %vm224_vm0, %v211_v3 }
  0x16   : > { %415 = vmatmul.mubr.msk.f32.vlgmr.msra.gmra.mrb[0].mxu0 %vm220_vm1, %v210_v5 }
  0x87   : > { %v216_v6 = vpop.permute.xlu0 %215 }
  0xe9   : > { %v295_v7 = vpop.f32.mrb[0].mxu0 }
  0xea   : > { %v296_v8 = vadd.f32 %v295_v7, %v216_v6  ;;  %v297_v9 = vpop.f32.mrb[1].mxu0 }
  0xeb   : > { %v298_v10 = vadd.f32 %v297_v9, %v216_v6 }
  0xec   : > { %v416_v11 = vmul.f32 -1.442695, %v296_v8 }
  0xed   : > { %v417_v12 = vmul.f32 -1.442695, %v298_v10 }
  0xee   : > { %450 = vpow2.f32 %v416_v11 }
  0xef   : > { %452 = vpow2.f32 %v417_v12 }
  0xf8   : > { %v451_v13 = vpop.eup %450 }
  0xf9   : > { %v453_v14 = vpop.eup %452  ;;  %v306_v15 = vadd.f32 1.0, %v451_v13 }
  0xfa   : > { %v307_v16 = vadd.f32 1.0, %v453_v14 }
  0xfb   : > { %454 = vrcp.f32 %v306_v15 }
  0xfc   : > { %456 = vrcp.f32 %v307_v16 }
 0x105   : > { %v455_v17 = vpop.eup %454 }
 0x106   : > { %v457_v18 = vpop.eup %456 }
 0x107   : > { %v314_v19 = vcombine.low %v455_v17, %v457_v18 }
 0x109   : > { %316 = vst [vmem:[%s208_s26] sm:$0x77] %v314_v19 }
 0x10a PF: > { %s13_s14 = sadd.s32 1, %s480_s14   ;;  %s550_s12 = smov %s476_s13 }
 0x10b   : > { %p10_p5 = scmp.ge.s32.totalorder %s13_s14, 4   ;;  %s551_s13 = smov %s553_s15 }
 0x10d   :  { %12 = sbr.rel (!%p10_p5) target bundleno = 2 (0x2), region = 62 }

</bundles_post_ra>
